<compile_context>
chip_gen: v7x
topology: tpu7x:2x2x1
jax: 0.10.0
libtpu: 0.0.40
codegen_flags: <defaults>
</compile_context>

<pallas_src>
import functools

import jax
import jax.numpy as jnp
from jax import lax
from jax.experimental import pallas as pl
from jax.experimental.pallas import tpu as pltpu


def _focal_loss_kernel(logit_ref, target_ref, out_ref, acc_ref, *,
                       gamma, hi, lo, smooth, hw, tl):
    """Grid = (N, num_spatial_tiles).  Each step processes a (C, TL) slab of
    one batch element, accumulates per-position losses element-wise, and on
    the last spatial tile writes this batch element's partial loss sum."""
    l_i = pl.program_id(1)

    @pl.when(l_i == 0)
    def _():
        acc_ref[...] = jnp.zeros_like(acc_ref)

    logit = logit_ref[0].astype(jnp.float32)      # (C, TL)
    tgt = target_ref[0]                           # (1, TL) int32
    c_dim = logit.shape[0]

    # one_hot_key.scatter_(1, idx, 1) followed by clamp(lo, hi): each channel
    # is `hi` where it matches the target and `lo` elsewhere.  Channel index
    # is the sublane index in this layout, so a tiny iota over C suffices.
    ch = lax.broadcasted_iota(jnp.int32, (c_dim, tl), 0)
    one_hot = jnp.where(ch == tgt, jnp.float32(hi), jnp.float32(lo))

    # pt = (one_hot * logit).sum(channel) + smooth   -> (1, TL)
    pt = jnp.sum(one_hot * logit, axis=0, keepdims=True) + jnp.float32(smooth)

    # Mask spatial positions past H*W (partial last tile): pt == 1 makes the
    # loss contribution exactly zero (log(1) == 0, (1 - 1)^2 == 0).
    col = l_i * tl + lax.broadcasted_iota(jnp.int32, (1, tl), 1)
    pt = jnp.where(col < hw, pt, jnp.float32(1.0))

    omp = jnp.float32(1.0) - pt
    if float(gamma) == 2.0:
        focal = omp * omp                          # matches torch.pow(x, 2)
    elif float(gamma) == round(float(gamma)):
        focal = lax.integer_pow(omp, int(round(float(gamma))))
    else:
        # float exponent: clamp base to avoid NaN for tiny negative (1 - pt)
        focal = jnp.power(jnp.maximum(omp, 0.0), jnp.float32(gamma))

    # alpha is all-ones on the alpha=None path -> alpha[idx] == 1.0
    loss = -focal * jnp.log(pt)                    # (1, TL)

    acc_ref[...] += loss                           # element-wise VPU add

    @pl.when(l_i == pl.num_programs(1) - 1)
    def _():
        # Single cross-lane/sublane reduce per batch element.
        out_ref[...] = jnp.sum(acc_ref[...]).reshape(1, 1, 1)


def focal_loss(logit_nchw, target, *, gamma=2.0, smooth=1e-5, tl=None):
    """logit_nchw: (N, C, H, W) float32; target: (N, 1, H, W) or (N, H, W) int."""
    n, c, h, w = logit_nchw.shape
    hw = h * w

    # View-only reshapes: keep the native NCHW memory layout.
    logit_3d = logit_nchw.reshape(n, c, hw)
    target_3d = target.reshape(n, 1, hw).astype(jnp.int32)

    # Lane-tile size: aim for ~1 MiB of logits per block, capped at 32768
    # lanes (keeps double-buffered VMEM use at a few MB -> safe on v7x).
    if tl is None:
        tl = max(128, min(32768, (1 << 20) // (4 * c)))
    tl = max(128, (tl // 128) * 128)
    if hw % 128 == 0:
        tl = min(tl, hw)
    else:
        tl = hw  # ragged / small spatial dim: take the full last dim
    num_l = pl.cdiv(hw, tl)
    grid = (n, num_l)

    hi = 1.0 - smooth
    # TODO(synk): torch divides by zero when num_class == 1; guard it here.
    lo = smooth / (c - 1) if c > 1 else 0.0

    kernel = functools.partial(
        _focal_loss_kernel,
        gamma=float(gamma),
        hi=float(hi),
        lo=float(lo),
        smooth=float(smooth),
        hw=int(hw),
        tl=int(tl),
    )

    partials = pl.pallas_call(
        kernel,
        out_shape=jax.ShapeDtypeStruct((n, 1, 1), jnp.float32),
        grid_spec=pltpu.PrefetchScalarGridSpec(
            num_scalar_prefetch=0,
            grid=grid,
            in_specs=[
                pl.BlockSpec((1, c, tl), lambda ni, li: (ni, 0, li)),
                pl.BlockSpec((1, 1, tl), lambda ni, li: (ni, 0, li)),
            ],
            out_specs=pl.BlockSpec((1, 1, 1), lambda ni, li: (ni, 0, 0)),
            scratch_shapes=[pltpu.VMEM((1, tl), jnp.float32)],
        ),
        compiler_params=pltpu.CompilerParams(
            # batch axis parallel (megacore on v7x); spatial reduction sequential
            dimension_semantics=("parallel", "arbitrary"),
        ),
    )(logit_3d, target_3d)

    return jnp.sum(partials) / jnp.float32(n * hw)   # size_average=True


def focal_loss_ref(logit_nchw, target, *, gamma=2.0, smooth=1e-5):
    """Pure-JAX reference mirroring the PyTorch forward (alpha=None)."""
    n, c, h, w = logit_nchw.shape
    logit_2d = jnp.transpose(logit_nchw, (0, 2, 3, 1)).reshape(-1, c)
    tgt = target.reshape(-1).astype(jnp.int32)
    one_hot = jax.nn.one_hot(tgt, c, dtype=jnp.float32)
    one_hot = jnp.clip(one_hot, smooth / (c - 1), 1.0 - smooth)
    pt = jnp.sum(one_hot * logit_2d, axis=1) + smooth
    logpt = jnp.log(pt)
    omp = 1.0 - pt
    loss = -1.0 * (omp * omp) * logpt   # gamma == 2
    return jnp.mean(loss)


if __name__ == "__main__":
    key = jax.random.PRNGKey(0)
    k1, k2 = jax.random.split(key)

    N, C, H, W = 2, 4, 16, 16
    # The module (with apply_nonlin=None) expects probability-like logits
    # (it takes log(pt) directly), so build a softmax over channels.
    raw = jax.random.normal(k1, (N, C, H, W), dtype=jnp.float32)
    logit = jax.nn.softmax(raw, axis=1)
    target = jax.random.randint(k2, (N, 1, H, W), 0, C, dtype=jnp.int32)

    out = focal_loss(logit, target, gamma=2.0, smooth=1e-5)
    out = jax.block_until_ready(out)

    ref = focal_loss_ref(logit, target, gamma=2.0, smooth=1e-5)
    assert jnp.allclose(out, ref, rtol=1e-5, atol=1e-6), (out, ref)

    print("KERNEL_OK")
</pallas_src>

<mosaic_0001>
module attributes {stable_mosaic.version = 11 : i64} {
  func.func @_focal_loss_kernel(%arg0: i32, %arg1: i32, %arg2: memref<1x4x256xf32, #tpu.memory_space<vmem>>, %arg3: memref<1x1x256xi32, #tpu.memory_space<vmem>>, %arg4: memref<1x1x1xf32, #tpu.memory_space<vmem>>, %arg5: memref<1x256xf32, #tpu.memory_space<vmem>>) attributes {dimension_semantics = [#tpu.dimension_semantics<parallel>, #tpu.dimension_semantics<arbitrary>], iteration_bounds = array<i64: 2, 1>, scalar_prefetch = 0 : i64, scratch_operands = 1 : i64, tpu.core_type = #tpu.core_type<tc>, window_params = [{transform_indices = @transform_0, window_bounds = array<i64: 1, 4, 256>}, {transform_indices = @transform_1, window_bounds = array<i64: 1, 1, 256>}, {transform_indices = @transform_2, window_bounds = array<i64: 1, 1, 1>}]} {
    %c0_i32 = arith.constant 0 : i32
    %0 = arith.cmpi eq, %arg1, %c0_i32 : i32
    %1 = arith.extui %0 : i1 to i32
    %c0_i32_0 = arith.constant 0 : i32
    %2 = arith.cmpi ne, %1, %c0_i32_0 : i32
    scf.if %2 {
      %cst_19 = arith.constant 0.000000e+00 : f32
      %39 = vector.broadcast %cst_19 : f32 to vector<1x256xf32>
      %c0_20 = arith.constant 0 : index
      %c0_21 = arith.constant 0 : index
      %40 = vector.load %arg5[%c0_20, %c0_21] : memref<1x256xf32, #tpu.memory_space<vmem>>, vector<1x256xf32>
      tpu.vector_store %arg5[%c0_20, %c0_21], %39 {strides = array<i32>} : memref<1x256xf32, #tpu.memory_space<vmem>>, vector<1x256xf32>,
    } else {
    }
    %c0 = arith.constant 0 : index
    %c0_1 = arith.constant 0 : index
    %c0_2 = arith.constant 0 : index
    %3 = vector.load %arg2[%c0, %c0_1, %c0_2] : memref<1x4x256xf32, #tpu.memory_space<vmem>>, vector<1x4x256xf32>
    %4 = vector.shape_cast %3 : vector<1x4x256xf32> to vector<4x256xf32>
    %c0_3 = arith.constant 0 : index
    %c0_4 = arith.constant 0 : index
    %c0_5 = arith.constant 0 : index
    %5 = vector.load %arg3[%c0_3, %c0_4, %c0_5] : memref<1x1x256xi32, #tpu.memory_space<vmem>>, vector<1x1x256xi32>
    %6 = vector.shape_cast %5 : vector<1x1x256xi32> to vector<1x256xi32>
    %7 = tpu.iota {dimensions = array<i32: 0>} : vector<4x256xi32>
    %8 = vector.broadcast %6 : vector<1x256xi32> to vector<4x256xi32>
    %9 = arith.cmpi eq, %7, %8 : vector<4x256xi32>
    %cst = arith.constant 0.999989986 : f32
    %cst_6 = arith.constant 3.33333332E-6 : f32
    %10 = vector.broadcast %cst : f32 to vector<4x256xf32>
    %11 = vector.broadcast %cst_6 : f32 to vector<4x256xf32>
    %12 = arith.select %9, %10, %11 : vector<4x256xi1>, vector<4x256xf32>
    %13 = arith.mulf %12, %4 : vector<4x256xf32>
    %cst_7 = arith.constant dense<0.000000e+00> : vector<256xf32>
    %14 = vector.multi_reduction <add>, %13, %cst_7 [0] : vector<4x256xf32> to vector<256xf32>
    %15 = vector.shape_cast %14 : vector<256xf32> to vector<1x256xf32>
    %cst_8 = arith.constant 9.99999974E-6 : f32
    %16 = vector.broadcast %cst_8 : f32 to vector<1x256xf32>
    %17 = arith.addf %15, %16 : vector<1x256xf32>
    %c256_i32 = arith.constant 256 : i32
    %18 = arith.muli %arg1, %c256_i32 : i32
    %19 = tpu.iota {dimensions = array<i32: 1>} : vector<1x256xi32>
    %20 = vector.broadcast %18 : i32 to vector<1x256xi32>
    %21 = arith.addi %20, %19 : vector<1x256xi32>
    %c256_i32_9 = arith.constant 256 : i32
    %22 = vector.broadcast %c256_i32_9 : i32 to vector<1x256xi32>
    %23 = arith.cmpi slt, %21, %22 : vector<1x256xi32>
    %cst_10 = arith.constant 1.000000e+00 : f32
    %24 = vector.broadcast %cst_10 : f32 to vector<1x256xf32>
    %25 = arith.select %23, %17, %24 : vector<1x256xi1>, vector<1x256xf32>
    %cst_11 = arith.constant 1.000000e+00 : f32
    %26 = vector.broadcast %cst_11 : f32 to vector<1x256xf32>
    %27 = arith.subf %26, %25 : vector<1x256xf32>
    %28 = arith.mulf %27, %27 : vector<1x256xf32>
    %cst_12 = arith.constant 0.000000e+00 : f32
    %29 = vector.broadcast %cst_12 : f32 to vector<1x256xf32>
    %30 = arith.subf %29, %28 : vector<1x256xf32>
    %31 = math.log %25 : vector<1x256xf32>
    %32 = arith.mulf %30, %31 : vector<1x256xf32>
    %c0_13 = arith.constant 0 : index
    %c0_14 = arith.constant 0 : index
    %33 = vector.load %arg5[%c0_13, %c0_14] : memref<1x256xf32, #tpu.memory_space<vmem>>, vector<1x256xf32>
    %34 = arith.addf %33, %32 : vector<1x256xf32>
    %c0_15 = arith.constant 0 : index
    %c0_16 = arith.constant 0 : index
    %35 = vector.load %arg5[%c0_15, %c0_16] : memref<1x256xf32, #tpu.memory_space<vmem>>, vector<1x256xf32>
    tpu.vector_store %arg5[%c0_15, %c0_16], %34 {strides = array<i32>} : memref<1x256xf32, #tpu.memory_space<vmem>>, vector<1x256xf32>,
    %c0_i32_17 = arith.constant 0 : i32
    %36 = arith.cmpi eq, %arg1, %c0_i32_17 : i32
    %37 = arith.extui %36 : i1 to i32
    %c0_i32_18 = arith.constant 0 : i32
    %38 = arith.cmpi ne, %37, %c0_i32_18 : i32
    scf.if %38 {
      %c0_19 = arith.constant 0 : index
      %c0_20 = arith.constant 0 : index
      %39 = vector.load %arg5[%c0_19, %c0_20] : memref<1x256xf32, #tpu.memory_space<vmem>>, vector<1x256xf32>
      %40 = vector.shape_cast %39 : vector<1x256xf32> to vector<1x1x256xf32>
      %cst_21 = arith.constant dense<0.000000e+00> : vector<1xf32>
      %41 = vector.multi_reduction <add>, %40, %cst_21 [1, 2] : vector<1x1x256xf32> to vector<1xf32>
      %42 = vector.shape_cast %41 : vector<1xf32> to vector<1x1x1xf32>
      %43 = vector.extract %42[0, 0, 0] : f32 from vector<1x1x1xf32>
      %44 = vector.broadcast %43 : f32 to vector<1x1x1xf32>
      %c0_22 = arith.constant 0 : index
      %c0_23 = arith.constant 0 : index
      %c0_24 = arith.constant 0 : index
      %45 = vector.load %arg4[%c0_22, %c0_23, %c0_24] : memref<1x1x1xf32, #tpu.memory_space<vmem>>, vector<1x1x1xf32>
      tpu.vector_store %arg4[%c0_22, %c0_23, %c0_24], %44 {strides = array<i32>} : memref<1x1x1xf32, #tpu.memory_space<vmem>>, vector<1x1x1xf32>,
    } else {
    }
    return
  }
  func.func @transform_0(%arg0: i32, %arg1: i32) -> (i32, i32, i32) {
    %c0_i32 = arith.constant 0 : i32
    %c0_i32_0 = arith.constant 0 : i32
    return %arg0, %c0_i32, %arg1 : i32, i32, i32
  }
  func.func @transform_1(%arg0: i32, %arg1: i32) -> (i32, i32, i32) {
    %c0_i32 = arith.constant 0 : i32
    %c0_i32_0 = arith.constant 0 : i32
    return %arg0, %c0_i32, %arg1 : i32, i32, i32
  }
  func.func @transform_2(%arg0: i32, %arg1: i32) -> (i32, i32, i32) {
    %c0_i32 = arith.constant 0 : i32
    %c0_i32_0 = arith.constant 0 : i32
    %c0_i32_1 = arith.constant 0 : i32
    return %arg0, %c0_i32, %c0_i32_0 : i32, i32, i32
  }
}

</mosaic_0001>

<bundles_post_ra>
// kernel: tpu_custom_call.1
= control target key start
LH: loop header
LB: loop body
LE: loop exit
PB: predicated region body
PF: predicated region fallthrough
CT: control target
= control target key end

     0   :  { %7 = vsyncpa [#allocation4], 0  ;;  %s837_s0 = inlined_call_operand.hbm [shape: f32[2,4,256], index: 0, kind: input, shape index: {}]   ;;  %s838_s1 = inlined_call_operand.hbm [shape: s32[2,1,256], index: 1, kind: input, shape index: {}]   ;;  %s839_s2 = inlined_call_operand.vmem [shape: f32[2,1,1], index: 2, kind: output, shape index: {}]  }
   0x1   :  { %9 = vsyncpa [#allocation4 + $0x1], 0 }
   0x2   :  { %10 = vsyncpa [#allocation6], 0 }
   0x3   :  { %12 = vsyncpa [#allocation6 + $0x1], 0  ;;  %s663_s9 = smov 0   ;;  %s665_s10 = smov 0  }
   0x4   :  { %s667_s11 = smov 0   ;;  %s669_s12 = smov 0  }
   0x5   :  { %s671_s13 = smov 0   ;;  %s673_s14 = smov 0  }
   0x6 LB: > { %s440_s15 = sadd.s32 4294967295, %s641_s14   ;;  %s30_s16 = sadd.s32 1, %s637_s13  ;;  %s641_s14 = sphi %s673_s14, %s18_s14   ;;  %s637_s13 = sphi %s671_s13, %s855_s13   ;;  %s633_s12 = sphi %s669_s12, %s854_s12   ;;  %s629_s11 = sphi %s667_s11, %s853_s11   ;;  %s625_s10 = sphi %s665_s10, %s852_s10   ;;  %s621_s9 = sphi %s663_s9, %s851_s9  }
   0x7   : > { %p32_p0 = scmp.ge.s32.totalorder %s30_s16, 2  ;;  %s39_s17 = sadd.s32 1, %s629_s11 }
   0x8   : > { %p46_p1 = scmp.ne.s32.totalorder %s629_s11, %s625_s10  ;;  %p47_p2 = scmp.eq.s32.totalorder %s641_s14, 0 }
   0x9   : > { %s857_s16 = smov (%p32_p0, %s30_s16), 0  ;;  %p52_p4 = scmp.ne.s32.totalorder %s625_s10, %s621_s9 }
   0xa   : > { %p699_p3 = por %p47_p2, %p46_p1  ;;  %s34_s19 = ssub.s32 %s637_s13, %s857_s16 }
   0xb   : > { %p53_p5 = scmp.eq.s32.totalorder %s440_s15, 0  ;;  %p37_p6 = scmp.eq.s32.totalorder %s34_s19, 0 }
   0xc   : > { %p470_p8 = scmp.lt.s32.totalorder %s641_s14, 2  ;;  %s715_s22 = sand.u32 1, %s629_s11  }
   0xd   : > { %p706_p7 = por %p53_p5, %p52_p4  ;;  %s455_s23 = sshll.u32 %s637_s13, 7 }
   0xe   : > { %s712_s21 = scalar_select %p37_p6, %s629_s11, %s39_s17  }
   0xf   : > { %s842_s20 = scalar_select %p706_p7, 1, 0 }
  0x10   : > { %s444_s24 = sshll.u32 %s715_s22, 3  ;;  %s722_s27 = scalar_lea.hbm %s837_s0, %s455_s23 }
  0x11   : > { %s134_s28 = scalar_lea.vmem [#allocation3], %s444_s24  ;;  %p726_p9 = pnand %p470_p8, %p699_p3 }
  0x12   : > { %s144_s29 = sshll.u32 %s134_s28, 4  ;;  %s131_s3 = scalar_lea.sflag [#allocation4], %s715_s22  ;;  %s730_s29 = int_to_ptr.vmem [resolvable:$true] %s144_s29 }
  0x13   : > { %s527_s4 = scalar_lea.hbm %s722_s27, 128  ;;  %p529_p13 = pneg %p726_p9 }
  0x14   : > { %p528_p12 = scmp.ne.s32.totalorder %s722_s27, %s527_s4  ;;  %s532_s7 = scalar_lea.hbm %s837_s0, 256 }
  0x15   : > { %p533_p2 = scmp.lt.u32.totalorder %s722_s27, %s837_s0  ;;  %p534_p3 = scmp.lt.u32.totalorder %s532_s7, %s527_s4 }
  0x16   : > { %p530_p0 = pnand %p529_p13, %p528_p12  ;;  %p536_p5 = scmp.lt.u32.totalorder %s527_s4, %s722_s27 }
  0x17   : > { %p535_p4 = por %p534_p3, %p533_p2 }
  0x18   : > { %p531_p1 = pneg %p530_p0 }
  0x19   : > { %p537_p6 = por %p536_p5, %p535_p4 }
  0x1b   : > { %p538_p8 = pnand %p537_p6, %p531_p1 }
  0x1d   : > { %541 = shalt.err (!%p538_p8)
}
  0x1e   : > { %s542_s15 = scalar_lea.vmem %s730_s29, 128  ;;  %s643_s17 = smov [#allocation3]  }
  0x1f   : > { %p543_p12 = scmp.ne.s32.totalorder %s730_s29, %s542_s15  ;;  %s547_s18 = sshll.u32 %s643_s17, 4  ;;  %s548_s18 = int_to_ptr.vmem [resolvable:$false] %s547_s18 }
  0x20   : > { %s549_s19 = scalar_lea.vmem %s548_s18, 256  ;;  %p550_p11 = scmp.lt.s32.totalorder %s730_s29, %s548_s18 }
  0x21   : > { %p545_p0 = pnand %p543_p12, %p529_p13  ;;  %p551_p2 = scmp.lt.s32.totalorder %s549_s19, %s542_s15 }
  0x23   : > { %p546_p10 = pneg %p545_p0  ;;  %p552_p3 = por %p551_p2, %p550_p11 }
  0x25   : > { %p553_p4 = pnand %p552_p3, %p546_p10 }
  0x27   : > { %556 = shalt.err (!%p553_p4)
}
  0x28   : > { %466 = dma.hbm_to_vmem [thread:$0]  (!%p726_p9), %s722_s27, 128, %s730_s29, %s131_s3  }
  0x29   : > { %p844_p1 = scmp.lt.s32.totalorder %s641_s14, 3  ;;  %p845_p5 = scmp.ge.s32.totalorder %s641_s14, 1 }
  0x2a   : > { %s447_s24 = sshll.u32 %s715_s22, 1  ;;  %s456_s25 = sshll.u32 %s637_s13, 5 }
  0x2b   : > { %p764_p6 = pnand %p845_p5, %p844_p1  ;;  %s773_s4 = scalar_lea.hbm %s838_s1, %s456_s25 }
  0x2c   : > { %s155_s5 = scalar_lea.vmem [#allocation5], %s447_s24  ;;  %s152_s27 = scalar_lea.sflag [#allocation6], %s715_s22 }
  0x2d   : > { %s846_s23 = scalar_select %p764_p6, 1, 0 }
  0x2e   : > { %s165_s6 = sshll.u32 %s155_s5, 4  ;;  %s557_s29 = scalar_lea.hbm %s773_s4, 32  ;;  %s166_s6 = int_to_ptr.vmem [resolvable:$true] %s165_s6 }
  0x2f   : > { %p558_p10 = scmp.ne.s32.totalorder %s773_s4, %s557_s29  ;;  %s562_s8 = scalar_lea.hbm %s838_s1, 64 }
  0x30   : > { %p563_p12 = scmp.lt.u32.totalorder %s773_s4, %s838_s1  ;;  %p564_p0 = scmp.lt.u32.totalorder %s562_s8, %s557_s29 }
  0x31   : > { %p560_p11 = pnand %p558_p10, %p529_p13  ;;  %p566_p3 = scmp.lt.u32.totalorder %s557_s29, %s773_s4 }
  0x32   : > { %p565_p2 = por %p564_p0, %p563_p12 }
  0x33   : > { %p561_p8 = pneg %p560_p11 }
  0x34   : > { %p567_p4 = por %p566_p3, %p565_p2 }
  0x36   : > { %p568_p1 = pnand %p567_p4, %p561_p8 }
  0x38   : > { %571 = shalt.err (!%p568_p1)
}
  0x39   : > { %s572_s22 = scalar_lea.vmem %s166_s6, 32  ;;  %s644_s17 = smov [#allocation5]  }
  0x3a   : > { %p573_p5 = scmp.ne.s32.totalorder %s166_s6, %s572_s22  ;;  %s577_s18 = sshll.u32 %s644_s17, 4  ;;  %s578_s18 = int_to_ptr.vmem [resolvable:$false] %s577_s18 }
  0x3b   : > { %s579_s19 = scalar_lea.vmem %s578_s18, 64  ;;  %p580_p7 = scmp.lt.s32.totalorder %s166_s6, %s578_s18 }
  0x3c   : > { %p575_p10 = pnand %p573_p5, %p529_p13  ;;  %p581_p6 = scmp.lt.s32.totalorder %s579_s19, %s572_s22 }
  0x3e   : > { %p576_p11 = pneg %p575_p10  ;;  %p582_p0 = por %p581_p6, %p580_p7 }
  0x40   : > { %p583_p12 = pnand %p582_p0, %p576_p11 }
  0x42   : > { %586 = shalt.err (!%p583_p12)
}
  0x43   : > { %469 = dma.hbm_to_vmem [thread:$0]  (!%p726_p9), %s773_s4, 32, %s166_s6, %s152_s27  }
  0x44   : > { %p847_p8 = scmp.ne.s32.totalorder %s846_s23, 0 }
  0x45   : > { %s176_s24 = sand.u32 (!%p847_p8), 1, %s625_s10   ;;  %p848_p13 = scmp.ne.s32.totalorder (!%p847_p8), %s842_s20, 0 }
  0x46   : > { %174 = sbr.rel (%p847_p8) target bundleno = 351 (0x15f), region = 28  ;;  %s451_s25 = sshll.u32 (!%p847_p8), %s176_s24, 3 }
  0x47   : > { %s177_s26 = scalar_lea.sflag (!%p847_p8), [#allocation4], %s176_s24  ;;  %s180_s28 = scalar_lea.vmem (!%p847_p8), [#allocation3], %s451_s25 }
  0x4d   : > { %612 = dma.done.wait (%p848_p13), %s177_s26, 128  }
  0x4e   : > { %614 = vsyncadd (%p848_p13), %s177_s26, 4294967168  ;;  %s452_s5 = sshll.u32 %s176_s24, 1  ;;  %s186_s29 = scalar_lea.sflag [#allocation6], %s176_s24 }
  0x4f   : > { %s189_s30 = scalar_lea.vmem [#allocation5], %s452_s5 }
  0x50   : > { %616 = dma.done.wait (%p848_p13), %s186_s29, 32  }
  0x51   : > { %618 = vsyncadd (%p848_p13), %s186_s29, 4294967264  ;;  %v222_v0 = vlaneseq  ;;  %v645_v3 = vmov 0.0   ;;  %v227_v6 = vld [vmem:[%s180_s28] sm:$0xff]  ;;  %v228_v7 = vld [vmem:[%s189_s30] sm:$0x3]  ;;  %vm248_vm3 = vcmask 1043456  }
  0x52   : > { %v244_v10 = vcombine.high %v227_v6, %v227_v6  ;;  %v646_v11 = vmov 3.3333333e-06   ;;  %v647_v36 = vmov 1966171168   ;;  %vm328_vm4 = vcmask 1040384   ;;  %p215_p7 = scmp.lt.s32.totalorder %s633_s12, 1 }
  0x53   : > { %vm806_vm0 = vcmp.lt.s32.totalorder %v222_v0, 256  ;;  %v230_v2 = vshrl.u32 %v222_v0, 7  ;;  %v293_v37 = vunpack.c.l.s4 %v647_v36  ;;  %vm342_vm5 = vcmask 0  }
  0x54   : > { %226 = vst.msk [vmem:[#allocation2] sm:$0x3] %vm806_vm0, %v645_v3  ;;  %s859_s12 = smov (!%p215_p7, %s633_s12), 1 }
  0x55   : > { %v233_v4 = vsub.s32 0, %v230_v2  ;;  %v237_v5 = vsub.s32 1, %v230_v2  ;;  %v294_v41 = vunpack.c.0.s8 %v293_v37  ;;  %s217_s4 = scalar_lea.vmem %s839_s2, %s859_s12 }
  0x57   : > { %v234_v8 = vrot.slane %v228_v7, %v233_v4  ;;  %v238_v9 = vrot.slane %v228_v7, %v237_v5  ;;  %v297_v47 = vsub.s32 %v294_v41, %v230_v2 }
  0x59   : > { %vm239_vm1 = vcmp.eq.s32.totalorder %v230_v2, %v234_v8  ;;  %vm240_vm2 = vcmp.eq.s32.totalorder %v230_v2, %v238_v9 }
  0x5a   : > { %v241_v12 = vsel %vm239_vm1, 0.99999, %v646_v11  ;;  %v242_v13 = vsel %vm240_vm2, 0.99999, %v646_v11 }
  0x5b   : > { %v246_v14 = vmul.f32 %v241_v12, %v227_v6  ;;  %v247_v15 = vmul.f32 %v244_v10, %v242_v13  ;;  %v288_v50 = vld [vmem:[#allocation2] sm:$0x3] }
  0x5d   : > { %v249_v16 = vsel %vm248_vm3, %v246_v14, 0.0  ;;  %v256_v17 = vsel %vm248_vm3, %v247_v15, 0.0 }
  0x5e   : > { %v250_v18 = vrot.slane %v249_v16, 4  ;;  %v257_v19 = vrot.slane %v256_v17, 4 }
  0x60   : > { %v251_v20 = vadd.f32 %v250_v18, %v249_v16  ;;  %v258_v21 = vadd.f32 %v257_v19, %v256_v17 }
  0x62   : > { %v252_v22 = vrot.slane %v251_v20, 2  ;;  %v259_v23 = vrot.slane %v258_v21, 2 }
  0x64   : > { %v253_v24 = vadd.f32 %v252_v22, %v251_v20  ;;  %v260_v25 = vadd.f32 %v259_v23, %v258_v21 }
  0x66   : > { %v254_v26 = vrot.slane %v253_v24, 1  ;;  %v261_v27 = vrot.slane %v260_v25, 1 }
  0x68   : > { %v255_v28 = vadd.f32 %v254_v26, %v253_v24  ;;  %v262_v29 = vadd.f32 %v261_v27, %v260_v25 }
  0x6a   : > { %v263_v30 = vadd.f32 1e-05, %v255_v28  ;;  %v264_v31 = vadd.f32 1e-05, %v262_v29 }
  0x6c   : > { %523 = vlog2.f32 %v263_v30  ;;  %v276_v32 = vsub.f32 1.0, %v263_v30  ;;  %v277_v33 = vsub.f32 1.0, %v264_v31 }
  0x6d   : > { %525 = vlog2.f32 %v264_v31 }
  0x6e   : > { %v278_v34 = vmul.f32 %v276_v32, %v276_v32  ;;  %v279_v35 = vmul.f32 %v277_v33, %v277_v33 }
  0x70   : > { %v280_v38 = vsub.f32 0.0, %v278_v34  ;;  %v281_v40 = vsub.f32 0.0, %v279_v35 }
  0x76   : > { %v524_v39 = vpop.eup %523 }
  0x77   : > { %v526_v42 = vpop.eup %525  ;;  %v283_v43 = vmul.f32 0.6931472, %v524_v39 }
  0x78   : > { %v285_v44 = vmul.f32 0.6931472, %v526_v42 }
  0x79   : > { %v286_v45 = vmul.f32 %v283_v43, %v280_v38 }
  0x7a   : > { %v287_v46 = vmul.f32 %v285_v44, %v281_v40 }
  0x7c   : > { %v291_v48 = vcombine.low %v286_v45, %v287_v46 }
  0x7e   : > { %v298_v49 = vrot.slane %v291_v48, %v297_v47 }
  0x80   : > { %v305_v51 = vrot.slane %v298_v49, %v297_v47 }
  0x82   : > { %v307_v52 = vadd.f32 %v305_v51, %v288_v50 }
  0x84   : > { %312 = vst.msk [vmem:[#allocation2] sm:$0x3] %vm806_vm0, %v307_v52 }
  0x8b   : > { %v316_v53 = vld [vmem:[#allocation2] sm:$0x3] }
  0x8c   : > { %v321_v54 = vrot.slane %v316_v53, %v233_v4  ;;  %v325_v55 = vrot.slane %v316_v53, %v237_v5 }
  0x8e   : > { %v329_v56 = vsel %vm328_vm4, %v321_v54, 0.0  ;;  %v330_v57 = vsel %vm328_vm4, %v325_v55, 0.0 }
  0x8f   : > { %v331_v58 = vadd.f32 %v330_v57, %v329_v56 }
  0x91   : > { %332 = vadd.xlane.f32.xlu0 %v331_v58 }
 0x11e   : > { %v333_v59 = vpop.xlane.xlu0 %332 }
 0x11f   : > { %v334_v60 = vrot.slane %v333_v59, 4 }
 0x121   : > { %v335_v61 = vadd.f32 %v334_v60, %v333_v59 }
 0x123   : > { %v336_v62 = vrot.slane %v335_v61, 2 }
 0x125   : > { %v337_v63 = vadd.f32 %v336_v62, %v335_v61 }
 0x127   : > { %v338_v0 = vrot.slane %v337_v63, 1 }
 0x129   : > { %v339_v2 = vadd.f32 %v338_v0, %v337_v63 }
 0x12b   : > { %457 = vpush %v339_v2 }
 0x15c   : > { %s458_s6 = spop %457 }
 0x15d   : > { %v341_v1 = vstv %s458_s6 }
 0x15e   : > { %343 = vst.msk [vmem:[%s217_s4] sm:$0x1] %vm342_vm5, %v341_v1 }
 0x15f PF: > { %s18_s14 = sadd.s32 1, %s641_s14   ;;  %s851_s9 = smov %s625_s10 }
 0x160   : > { %p15_p9 = scmp.ge.s32.totalorder %s18_s14, 4   ;;  %s852_s10 = smov %s629_s11 }
 0x161   : > { %s853_s11 = smov %s712_s21  ;;  %s854_s12 = smov %s637_s13 }
 0x162   : > { %s855_s13 = smov %s857_s16  ;;  %17 = sbr.rel (!%p15_p9) target bundleno = 6 (0x6), region = 89 }
 0x169   :  { %361 = vsyncpa [#allocation4], 1 }
 0x16a   :  { %363 = vsyncpa [#allocation4 + $0x1], 1 }
 0x16b   :  { %364 = vsyncpa [#allocation6], 1 }
 0x16c   :  { %366 = vsyncpa [#allocation6 + $0x1], 1 }

</bundles_post_ra>
